<compile_context>
chip_gen: v5e
topology: v5e:2x2
jax: 0.10.0
libtpu: 0.0.40
codegen_flags: <defaults>
</compile_context>

<pallas_src>
import functools

import jax
import jax.numpy as jnp
from jax.experimental import pallas as pl
from jax.experimental.pallas import tpu as pltpu

LANE = 128
VMEM_LIMIT = 32 * 1024 * 1024  # safe on v5e/v6e/v7x


def _round_up(x, m):
    return (x + m - 1) // m * m


# ---------------------------------------------------------------------------
# Fused GCN layer kernel (row-tiled over A):
#   grid step 0:     G = X @ W            (VMEM scratch, reused by all tiles)
#   every grid step: out_tile = act(A_tile @ G + b)
#   act == "relu"        -> ReLU (layer 1)
#   act == "log_softmax" -> masked log_softmax over the first `valid_cols` lanes
# ---------------------------------------------------------------------------
def gcn_layer_kernel(a_ref, x_ref, w_ref, b_ref, out_ref, g_ref, *, act, valid_cols):
    @pl.when(pl.program_id(0) == 0)
    def _():
        g_ref[...] = jnp.dot(
            x_ref[...], w_ref[...], preferred_element_type=jnp.float32
        ).astype(g_ref.dtype)

    h = jnp.dot(a_ref[...], g_ref[...], preferred_element_type=jnp.float32)
    h = h + b_ref[...]                                   # bias after propagation
    if act == "relu":
        out_ref[...] = jnp.maximum(h, 0.0).astype(out_ref.dtype)
    else:
        # mask padded class lanes so they don't pollute the normalizer
        col = jax.lax.broadcasted_iota(jnp.int32, h.shape, 1)
        h = jnp.where(col < valid_cols, h, jnp.float32(-1e30))
        m = jnp.max(h, axis=-1, keepdims=True)
        z = h - m
        lse = jnp.log(jnp.sum(jnp.exp(z), axis=-1, keepdims=True))
        out_ref[...] = (z - lse).astype(out_ref.dtype)


def _gcn_layer(a_p, x_p, w_p, b_p, *, act, valid_cols, out_dtype, tm):
    n_pad = a_p.shape[0]
    f_pad = x_p.shape[1]
    d_pad = w_p.shape[1]
    kern = functools.partial(gcn_layer_kernel, act=act, valid_cols=valid_cols)
    return pl.pallas_call(
        kern,
        out_shape=jax.ShapeDtypeStruct((n_pad, d_pad), out_dtype),
        grid=(n_pad // tm,),
        in_specs=[
            pl.BlockSpec((tm, n_pad), lambda i: (i, 0)),      # A row tile (pipelined)
            pl.BlockSpec((n_pad, f_pad), lambda i: (0, 0)),   # X fully resident
            pl.BlockSpec((f_pad, d_pad), lambda i: (0, 0)),   # W fully resident
            pl.BlockSpec((1, d_pad), lambda i: (0, 0)),       # bias
        ],
        out_specs=pl.BlockSpec((tm, d_pad), lambda i: (i, 0)),
        scratch_shapes=[pltpu.VMEM((n_pad, d_pad), jnp.bfloat16)],  # G = X @ W
        compiler_params=pltpu.CompilerParams(
            # "arbitrary": the G scratch written at step 0 is reused by later steps.
            dimension_semantics=("arbitrary",),
            vmem_limit_bytes=VMEM_LIMIT,
        ),
    )(a_p, x_p, w_p, b_p)


@functools.partial(jax.jit, static_argnames=("tm",))
def gcn_forward(a_norm, x, w1, b1, w2, b2, *, tm=128):
    n, f = x.shape
    h_dim = w1.shape[1]
    c = w2.shape[1]
    n_pad = _round_up(n, tm)
    f_pad = _round_up(f, LANE)
    h_pad = _round_up(h_dim, LANE)
    c_pad = _round_up(c, LANE)

    # lane-dense zero padding + bf16 cast of all matmul operands
    a_p = jnp.zeros((n_pad, n_pad), jnp.bfloat16).at[:n, :n].set(a_norm.astype(jnp.bfloat16))
    x_p = jnp.zeros((n_pad, f_pad), jnp.bfloat16).at[:n, :f].set(x.astype(jnp.bfloat16))
    w1_p = jnp.zeros((f_pad, h_pad), jnp.bfloat16).at[:f, :h_dim].set(w1.astype(jnp.bfloat16))
    w2_p = jnp.zeros((h_pad, c_pad), jnp.bfloat16).at[:h_dim, :c].set(w2.astype(jnp.bfloat16))
    b1_p = jnp.zeros((1, h_pad), jnp.float32).at[:, :h_dim].set(b1.reshape(1, h_dim))
    b2_p = jnp.zeros((1, c_pad), jnp.float32).at[:, :c].set(b2.reshape(1, c))

    # ---- layer 1: relu(A @ (X @ W1) + b1) ----
    h1 = _gcn_layer(a_p, x_p, w1_p, b1_p, act="relu", valid_cols=h_pad,
                    out_dtype=jnp.bfloat16, tm=tm)

    # ---- dropout: module evaluated deterministically (eval mode) -> identity ----
    # TODO(synk): training-mode dropout (p=0.5) would need pltpu.prng_* bits.

    # ---- layer 2: log_softmax(A @ (H @ W2) + b2) over the C valid class lanes ----
    out_p = _gcn_layer(a_p, h1, w2_p, b2_p, act="log_softmax", valid_cols=c,
                       out_dtype=jnp.float32, tm=tm)
    return out_p[:n, :c]


# ---------------------------------------------------------------------------
# Glue (plain JAX): densify edge_index into the GCN-normalized adjacency.
# ---------------------------------------------------------------------------
def build_norm_adj(edge_index, num_nodes):
    src = edge_index[0]
    dst = edge_index[1]
    a = jnp.zeros((num_nodes, num_nodes), jnp.float32)
    # message flows source -> target; scatter-ADD so duplicate edges count
    # in both propagation and degree (matches PyG gcn_norm).
    a = a.at[dst, src].add(1.0)
    idx = jnp.arange(num_nodes)
    a = a.at[idx, idx].add(1.0)                     # self loops
    deg = jnp.sum(a, axis=1)
    dinv = jnp.where(deg > 0, jax.lax.rsqrt(deg), 0.0)
    return dinv[:, None] * a * dinv[None, :]


def glorot(key, shape):
    fan_in, fan_out = shape
    limit = jnp.sqrt(6.0 / (fan_in + fan_out))
    return jax.random.uniform(key, shape, jnp.float32, -limit, limit)


def gcn_reference(a_norm, x, w1, b1, w2, b2):
    h = a_norm @ (x @ w1) + b1
    h = jnp.maximum(h, 0.0)
    h = a_norm @ (h @ w2) + b2
    return jax.nn.log_softmax(h, axis=-1)


if __name__ == "__main__":
    NUM_FEATURE = 5
    HIDDEN = 5
    NUM_CLASSES = 8
    N_NODES = 16
    N_EDGES = 32

    key = jax.random.PRNGKey(0)
    k_x, k_e, k_w1, k_w2 = jax.random.split(key, 4)

    # deterministic synthetic graph: node features + undirected edges (no self loops)
    x = jax.random.normal(k_x, (N_NODES, NUM_FEATURE), jnp.float32)
    src = jax.random.randint(k_e, (N_EDGES,), 0, N_NODES)
    dst = (src + 1 + jax.random.randint(jax.random.fold_in(k_e, 1),
                                        (N_EDGES,), 0, N_NODES - 1)) % N_NODES
    edge_index = jnp.stack([jnp.concatenate([src, dst]),
                            jnp.concatenate([dst, src])], axis=0)  # (2, 2E)
    print(f"forward shape {x.shape} {edge_index.shape}")

    # deterministic parameters (GCNConv: weight (in, out) glorot, bias zeros)
    w1 = glorot(k_w1, (NUM_FEATURE, HIDDEN))
    b1 = jnp.zeros((HIDDEN,), jnp.float32)
    w2 = glorot(k_w2, (HIDDEN, NUM_CLASSES))
    b2 = jnp.zeros((NUM_CLASSES,), jnp.float32)

    a_norm = build_norm_adj(edge_index, N_NODES)

    out = gcn_forward(a_norm, x, w1, b1, w2, b2)
    out = jax.block_until_ready(out)
    print(f"last x {out.shape} {edge_index.shape}")

    # sanity 1: rows of log_softmax must exp-sum to 1
    row_sums = jnp.sum(jnp.exp(out), axis=1)
    assert out.shape == (N_NODES, NUM_CLASSES)
    assert bool(jnp.all(jnp.abs(row_sums - 1.0) < 1e-4))

    # sanity 2: matches pure-JAX f32 reference (loose tol: bf16 matmul operands)
    ref = gcn_reference(a_norm, x, w1, b1, w2, b2)
    assert bool(jnp.max(jnp.abs(out - ref)) < 1e-1)

    print("KERNEL_OK")
</pallas_src>

<mosaic_0001>
module attributes {stable_mosaic.version = 11 : i64} {
  func.func @gcn_layer_kernel(%arg0: i32, %arg1: memref<128x128xbf16, #tpu.memory_space<vmem>>, %arg2: memref<128x128xbf16, #tpu.memory_space<vmem>>, %arg3: memref<128x128xbf16, #tpu.memory_space<vmem>>, %arg4: memref<1x128xf32, #tpu.memory_space<vmem>>, %arg5: memref<128x128xbf16, #tpu.memory_space<vmem>>, %arg6: memref<128x128xbf16, #tpu.memory_space<vmem>>) attributes {dimension_semantics = [#tpu.dimension_semantics<arbitrary>], iteration_bounds = array<i64: 1>, scalar_prefetch = 0 : i64, scratch_operands = 1 : i64, tpu.core_type = #tpu.core_type<tc>, window_params = [{transform_indices = @transform_0, window_bounds = array<i64: 128, 128>}, {pipeline_mode = #tpu.pipeline_mode<synchronous>, transform_indices = @transform_1, window_bounds = array<i64: 128, 128>}, {pipeline_mode = #tpu.pipeline_mode<synchronous>, transform_indices = @transform_2, window_bounds = array<i64: 128, 128>}, {pipeline_mode = #tpu.pipeline_mode<synchronous>, transform_indices = @transform_3, window_bounds = array<i64: 1, 128>}, {transform_indices = @transform_4, window_bounds = array<i64: 128, 128>}]} {
    %c0_i32 = arith.constant 0 : i32
    %0 = arith.cmpi eq, %arg0, %c0_i32 : i32
    %1 = arith.extui %0 : i1 to i32
    %c0_i32_0 = arith.constant 0 : i32
    %2 = arith.cmpi ne, %1, %c0_i32_0 : i32
    scf.if %2 {
      %c0_9 = arith.constant 0 : index
      %c0_10 = arith.constant 0 : index
      %13 = vector.load %arg2[%c0_9, %c0_10] : memref<128x128xbf16, #tpu.memory_space<vmem>>, vector<128x128xbf16>
      %c0_11 = arith.constant 0 : index
      %c0_12 = arith.constant 0 : index
      %14 = vector.load %arg3[%c0_11, %c0_12] : memref<128x128xbf16, #tpu.memory_space<vmem>>, vector<128x128xbf16>
      %cst_13 = arith.constant dense<0.000000e+00> : vector<128x128xf32>
      %15 = tpu.matmul %13, %14, %cst_13 {dimension_numbers = #tpu.dot_dimension_numbers<[1], [0], [0], [1], [0, 0, 1, 1], [], []>} : vector<128x128xbf16>, vector<128x128xbf16>, vector<128x128xf32> -> vector<128x128xf32>
      %16 = arith.truncf %15 : vector<128x128xf32> to vector<128x128xbf16>
      %c0_14 = arith.constant 0 : index
      %c0_15 = arith.constant 0 : index
      %17 = vector.load %arg6[%c0_14, %c0_15] : memref<128x128xbf16, #tpu.memory_space<vmem>>, vector<128x128xbf16>
      tpu.vector_store %arg6[%c0_14, %c0_15], %16 {strides = array<i32>} : memref<128x128xbf16, #tpu.memory_space<vmem>>, vector<128x128xbf16>,
    } else {
    }
    %c0 = arith.constant 0 : index
    %c0_1 = arith.constant 0 : index
    %3 = vector.load %arg1[%c0, %c0_1] : memref<128x128xbf16, #tpu.memory_space<vmem>>, vector<128x128xbf16>
    %c0_2 = arith.constant 0 : index
    %c0_3 = arith.constant 0 : index
    %4 = vector.load %arg6[%c0_2, %c0_3] : memref<128x128xbf16, #tpu.memory_space<vmem>>, vector<128x128xbf16>
    %cst = arith.constant dense<0.000000e+00> : vector<128x128xf32>
    %5 = tpu.matmul %3, %4, %cst {dimension_numbers = #tpu.dot_dimension_numbers<[1], [0], [0], [1], [0, 0, 1, 1], [], []>} : vector<128x128xbf16>, vector<128x128xbf16>, vector<128x128xf32> -> vector<128x128xf32>
    %c0_4 = arith.constant 0 : index
    %c0_5 = arith.constant 0 : index
    %6 = vector.load %arg4[%c0_4, %c0_5] : memref<1x128xf32, #tpu.memory_space<vmem>>, vector<1x128xf32>
    %7 = vector.broadcast %6 : vector<1x128xf32> to vector<128x128xf32>
    %8 = arith.addf %5, %7 : vector<128x128xf32>
    %cst_6 = arith.constant 0.000000e+00 : f32
    %9 = vector.broadcast %cst_6 : f32 to vector<128x128xf32>
    %10 = arith.maximumf %8, %9 : vector<128x128xf32>
    %11 = arith.truncf %10 : vector<128x128xf32> to vector<128x128xbf16>
    %c0_7 = arith.constant 0 : index
    %c0_8 = arith.constant 0 : index
    %12 = vector.load %arg5[%c0_7, %c0_8] : memref<128x128xbf16, #tpu.memory_space<vmem>>, vector<128x128xbf16>
    tpu.vector_store %arg5[%c0_7, %c0_8], %11 {strides = array<i32>} : memref<128x128xbf16, #tpu.memory_space<vmem>>, vector<128x128xbf16>,
    return
  }
  func.func @transform_0(%arg0: i32) -> (i32, i32) {
    %c0_i32 = arith.constant 0 : i32
    %c0_i32_0 = arith.constant 0 : i32
    return %arg0, %c0_i32 : i32, i32
  }
  func.func @transform_1(%arg0: i32) -> (i32, i32) {
    %c0_i32 = arith.constant 0 : i32
    %c0_i32_0 = arith.constant 0 : i32
    %c0_i32_1 = arith.constant 0 : i32
    return %c0_i32, %c0_i32_0 : i32, i32
  }
  func.func @transform_2(%arg0: i32) -> (i32, i32) {
    %c0_i32 = arith.constant 0 : i32
    %c0_i32_0 = arith.constant 0 : i32
    %c0_i32_1 = arith.constant 0 : i32
    return %c0_i32, %c0_i32_0 : i32, i32
  }
  func.func @transform_3(%arg0: i32) -> (i32, i32) {
    %c0_i32 = arith.constant 0 : i32
    %c0_i32_0 = arith.constant 0 : i32
    %c0_i32_1 = arith.constant 0 : i32
    return %c0_i32, %c0_i32_0 : i32, i32
  }
  func.func @transform_4(%arg0: i32) -> (i32, i32) {
    %c0_i32 = arith.constant 0 : i32
    %c0_i32_0 = arith.constant 0 : i32
    return %arg0, %c0_i32 : i32, i32
  }
}

module attributes {stable_mosaic.version = 11 : i64} {
  func.func @gcn_layer_kernel(%arg0: i32, %arg1: memref<128x128xbf16, #tpu.memory_space<vmem>>, %arg2: memref<128x128xbf16, #tpu.memory_space<vmem>>, %arg3: memref<128x128xbf16, #tpu.memory_space<vmem>>, %arg4: memref<1x128xf32, #tpu.memory_space<vmem>>, %arg5: memref<128x128xf32, #tpu.memory_space<vmem>>, %arg6: memref<128x128xbf16, #tpu.memory_space<vmem>>) attributes {dimension_semantics = [#tpu.dimension_semantics<arbitrary>], iteration_bounds = array<i64: 1>, scalar_prefetch = 0 : i64, scratch_operands = 1 : i64, tpu.core_type = #tpu.core_type<tc>, window_params = [{transform_indices = @transform_0, window_bounds = array<i64: 128, 128>}, {pipeline_mode = #tpu.pipeline_mode<synchronous>, transform_indices = @transform_1, window_bounds = array<i64: 128, 128>}, {pipeline_mode = #tpu.pipeline_mode<synchronous>, transform_indices = @transform_2, window_bounds = array<i64: 128, 128>}, {pipeline_mode = #tpu.pipeline_mode<synchronous>, transform_indices = @transform_3, window_bounds = array<i64: 1, 128>}, {transform_indices = @transform_4, window_bounds = array<i64: 128, 128>}]} {
    %c0_i32 = arith.constant 0 : i32
    %0 = arith.cmpi eq, %arg0, %c0_i32 : i32
    %1 = arith.extui %0 : i1 to i32
    %c0_i32_0 = arith.constant 0 : i32
    %2 = arith.cmpi ne, %1, %c0_i32_0 : i32
    scf.if %2 {
      %c0_11 = arith.constant 0 : index
      %c0_12 = arith.constant 0 : index
      %25 = vector.load %arg2[%c0_11, %c0_12] : memref<128x128xbf16, #tpu.memory_space<vmem>>, vector<128x128xbf16>
      %c0_13 = arith.constant 0 : index
      %c0_14 = arith.constant 0 : index
      %26 = vector.load %arg3[%c0_13, %c0_14] : memref<128x128xbf16, #tpu.memory_space<vmem>>, vector<128x128xbf16>
      %cst_15 = arith.constant dense<0.000000e+00> : vector<128x128xf32>
      %27 = tpu.matmul %25, %26, %cst_15 {dimension_numbers = #tpu.dot_dimension_numbers<[1], [0], [0], [1], [0, 0, 1, 1], [], []>} : vector<128x128xbf16>, vector<128x128xbf16>, vector<128x128xf32> -> vector<128x128xf32>
      %28 = arith.truncf %27 : vector<128x128xf32> to vector<128x128xbf16>
      %c0_16 = arith.constant 0 : index
      %c0_17 = arith.constant 0 : index
      %29 = vector.load %arg6[%c0_16, %c0_17] : memref<128x128xbf16, #tpu.memory_space<vmem>>, vector<128x128xbf16>
      tpu.vector_store %arg6[%c0_16, %c0_17], %28 {strides = array<i32>} : memref<128x128xbf16, #tpu.memory_space<vmem>>, vector<128x128xbf16>,
    } else {
    }
    %c0 = arith.constant 0 : index
    %c0_1 = arith.constant 0 : index
    %3 = vector.load %arg1[%c0, %c0_1] : memref<128x128xbf16, #tpu.memory_space<vmem>>, vector<128x128xbf16>
    %c0_2 = arith.constant 0 : index
    %c0_3 = arith.constant 0 : index
    %4 = vector.load %arg6[%c0_2, %c0_3] : memref<128x128xbf16, #tpu.memory_space<vmem>>, vector<128x128xbf16>
    %cst = arith.constant dense<0.000000e+00> : vector<128x128xf32>
    %5 = tpu.matmul %3, %4, %cst {dimension_numbers = #tpu.dot_dimension_numbers<[1], [0], [0], [1], [0, 0, 1, 1], [], []>} : vector<128x128xbf16>, vector<128x128xbf16>, vector<128x128xf32> -> vector<128x128xf32>
    %c0_4 = arith.constant 0 : index
    %c0_5 = arith.constant 0 : index
    %6 = vector.load %arg4[%c0_4, %c0_5] : memref<1x128xf32, #tpu.memory_space<vmem>>, vector<1x128xf32>
    %7 = vector.broadcast %6 : vector<1x128xf32> to vector<128x128xf32>
    %8 = arith.addf %5, %7 : vector<128x128xf32>
    %9 = tpu.iota {dimensions = array<i32: 1>} : vector<128x128xi32>
    %c8_i32 = arith.constant 8 : i32
    %10 = vector.broadcast %c8_i32 : i32 to vector<128x128xi32>
    %11 = arith.cmpi slt, %9, %10 : vector<128x128xi32>
    %cst_6 = arith.constant -1.000000e+30 : f32
    %12 = vector.broadcast %cst_6 : f32 to vector<128x128xf32>
    %13 = arith.select %11, %8, %12 : vector<128x128xi1>, vector<128x128xf32>
    %cst_7 = arith.constant dense<0xFF800000> : vector<128xf32>
    %14 = vector.multi_reduction <maximumf>, %13, %cst_7 [1] : vector<128x128xf32> to vector<128xf32>
    %15 = vector.shape_cast %14 : vector<128xf32> to vector<128x1xf32>
    %16 = vector.broadcast %15 : vector<128x1xf32> to vector<128x128xf32>
    %17 = arith.subf %13, %16 : vector<128x128xf32>
    %18 = math.exp %17 : vector<128x128xf32>
    %cst_8 = arith.constant dense<0.000000e+00> : vector<128xf32>
    %19 = vector.multi_reduction <add>, %18, %cst_8 [1] : vector<128x128xf32> to vector<128xf32>
    %20 = vector.shape_cast %19 : vector<128xf32> to vector<128x1xf32>
    %21 = math.log %20 : vector<128x1xf32>
    %22 = vector.broadcast %21 : vector<128x1xf32> to vector<128x128xf32>
    %23 = arith.subf %17, %22 : vector<128x128xf32>
    %c0_9 = arith.constant 0 : index
    %c0_10 = arith.constant 0 : index
    %24 = vector.load %arg5[%c0_9, %c0_10] : memref<128x128xf32, #tpu.memory_space<vmem>>, vector<128x128xf32>
    tpu.vector_store %arg5[%c0_9, %c0_10], %23 {strides = array<i32>} : memref<128x128xf32, #tpu.memory_space<vmem>>, vector<128x128xf32>,
    return
  }
  func.func @transform_0(%arg0: i32) -> (i32, i32) {
    %c0_i32 = arith.constant 0 : i32
    %c0_i32_0 = arith.constant 0 : i32
    return %arg0, %c0_i32 : i32, i32
  }
  func.func @transform_1(%arg0: i32) -> (i32, i32) {
    %c0_i32 = arith.constant 0 : i32
    %c0_i32_0 = arith.constant 0 : i32
    %c0_i32_1 = arith.constant 0 : i32
    return %c0_i32, %c0_i32_0 : i32, i32
  }
  func.func @transform_2(%arg0: i32) -> (i32, i32) {
    %c0_i32 = arith.constant 0 : i32
    %c0_i32_0 = arith.constant 0 : i32
    %c0_i32_1 = arith.constant 0 : i32
    return %c0_i32, %c0_i32_0 : i32, i32
  }
  func.func @transform_3(%arg0: i32) -> (i32, i32) {
    %c0_i32 = arith.constant 0 : i32
    %c0_i32_0 = arith.constant 0 : i32
    %c0_i32_1 = arith.constant 0 : i32
    return %c0_i32, %c0_i32_0 : i32, i32
  }
  func.func @transform_4(%arg0: i32) -> (i32, i32) {
    %c0_i32 = arith.constant 0 : i32
    %c0_i32_0 = arith.constant 0 : i32
    return %arg0, %c0_i32 : i32, i32
  }
}

</mosaic_0001>

<bundles_post_ra>
// kernel: gcn_forward.2
= control target key start
LH: loop header
LB: loop body
LE: loop exit
PB: predicated region body
PF: predicated region fallthrough
CT: control target
= control target key end

     0   :  { %s858_s2 = inlined_call_operand.vmem [shape: bf16[128,128], index: 2, kind: input, shape index: {}]   ;;  %s859_s1 = inlined_call_operand.vmem [shape: bf16[128,128], index: 1, kind: input, shape index: {}]   ;;  %s860_s3 = inlined_call_operand.vmem [shape: f32[1,128], index: 3, kind: input, shape index: {}]   ;;  %s861_s0 = inlined_call_operand.vmem [shape: bf16[128,128], index: 0, kind: input, shape index: {}]   ;;  %s862_s4 = inlined_call_operand.vmem [shape: bf16[128,128], index: 4, kind: output, shape index: {}]  }
   0x1   :  { %v606_v0 = vld [vmem:[%s858_s2 + $0x38] sm:$0xff]  ;;  %v605_v1 = vld [vmem:[%s858_s2 + $0x30] sm:$0xff]  ;;  %v604_v2 = vld [vmem:[%s858_s2 + $0x28] sm:$0xff] }
   0x2   :  { %717 = vmatpush.bf16.msra.mxu2 %v606_v0  ;;  %149 = vmatpush.bf16.msra.mxu0 %v606_v0  ;;  %v603_v3 = vld [vmem:[%s858_s2 + $0x20] sm:$0xff]  ;;  %v602_v4 = vld [vmem:[%s858_s2 + $0x18] sm:$0xff]  ;;  %v601_v5 = vld [vmem:[%s858_s2 + $0x10] sm:$0xff] }
   0x3   :  { %v600_v6 = vld [vmem:[%s858_s2 + $0x8] sm:$0xff]  ;;  %v599_v7 = vld [vmem:[%s858_s2] sm:$0xff]  ;;  %v597_v12 = vld [vmem:[%s859_s1 + $0x30] sm:$0xff] }
   0x4   :  { %v595_v8 = vld [vmem:[%s859_s1 + $0x20] sm:$0xff]  ;;  %v596_v10 = vld [vmem:[%s859_s1 + $0x28] sm:$0xff]  ;;  %v593_v13 = vld [vmem:[%s859_s1 + $0x10] sm:$0xff] }
   0x5   :  { %v591_v9 = vld [vmem:[%s859_s1] sm:$0xff]  ;;  %v592_v11 = vld [vmem:[%s859_s1 + $0x8] sm:$0xff]  ;;  %v598_v14 = vld [vmem:[%s859_s1 + $0x38] sm:$0xff] }
   0x6   :  { %718 = vmatpush.bf16.msra.mxu2 %v605_v1  ;;  %150 = vmatpush.bf16.msra.mxu0 %v605_v1  ;;  %v594_v15 = vld [vmem:[%s859_s1 + $0x18] sm:$0xff]  ;;  %v607_v48 = vld [vmem:[%s861_s0] sm:$0xff]  ;;  %v608_v50 = vld [vmem:[%s861_s0 + $0x8] sm:$0xff] }
   0x7   :  { %v611_v49 = vld [vmem:[%s861_s0 + $0x20] sm:$0xff]  ;;  %v612_v51 = vld [vmem:[%s861_s0 + $0x28] sm:$0xff]  ;;  %v609_v52 = vld [vmem:[%s861_s0 + $0x10] sm:$0xff] }
   0x8   :  { %v613_v53 = vld [vmem:[%s861_s0 + $0x30] sm:$0xff]  ;;  %v610_v54 = vld [vmem:[%s861_s0 + $0x18] sm:$0xff]  ;;  %v733_v57 = vld [vmem:[%s860_s3] ss:$0 sm:$0xff] }
   0x9   :  { %v614_v55 = vld [vmem:[%s861_s0 + $0x38] sm:$0xff] }
   0xa   :  { %719 = vmatpush.bf16.msra.mxu2 %v604_v2  ;;  %151 = vmatpush.bf16.msra.mxu0 %v604_v2 }
   0xe   :  { %720 = vmatpush.bf16.msra.mxu2 %v603_v3  ;;  %152 = vmatpush.bf16.msra.mxu0 %v603_v3 }
  0x12   :  { %721 = vmatpush.bf16.msra.mxu2 %v602_v4  ;;  %153 = vmatpush.bf16.msra.mxu0 %v602_v4 }
  0x16   :  { %722 = vmatpush.bf16.msra.mxu2 %v601_v5  ;;  %154 = vmatpush.bf16.msra.mxu0 %v601_v5 }
  0x1a   :  { %723 = vmatpush.bf16.msra.mxu2 %v600_v6  ;;  %155 = vmatpush.bf16.msra.mxu0 %v600_v6 }
  0x1e   :  { %724 = vmatpush.bf16.msra.mxu2 %v599_v7  ;;  %156 = vmatpush.bf16.msra.mxu0 %v599_v7 }
  0x21   :  { %177 = vmatmul.bf16.vlgmr.msra.gmra.mxu2 %v595_v8  ;;  %157 = vmatmul.bf16.vlgmr.msra.gmra.mxu0 %v591_v9 }
  0x31   :  { %182 = vmatmul.bf16.gmra.mxu2 %v596_v10  ;;  %162 = vmatmul.bf16.gmra.mxu0 %v592_v11 }
  0x41   :  { %187 = vmatmul.bf16.gmra.mxu2 %v597_v12  ;;  %167 = vmatmul.bf16.gmra.mxu0 %v593_v13 }
  0x51   :  { %192 = vmatmul.bf16.gmra.mxu2 %v598_v14  ;;  %172 = vmatmul.bf16.gmra.mxu0 %v594_v15 }
  0x9e   :  { %v158_v16 = vpop.f32.mrf.mxu0 }
  0xa4   :  { %v178_v17 = vpop.f32.mrf.mxu2 }
  0xa6   :  { %v160_v18 = vpop.f32.mrf.mxu0 }
  0xa7   :  { %v626_v19 = vpack.c.bf16 %v160_v18, %v158_v16 }
  0xa9   :  { %627 = vst [vmem:[#allocation2 + $0x30] sm:$0xff] %v626_v19  }
  0xac   :  { %v180_v20 = vpop.f32.mrf.mxu2 }
  0xad   :  { %v646_v21 = vpack.c.bf16 %v180_v20, %v178_v17 }
  0xae   :  { %v163_v22 = vpop.f32.mrf.mxu0 }
  0xaf   :  { %706 = vst [vmem:[#allocation2 + $0x8] sm:$0xff] %v646_v21  }
  0xb0   :  { %v615_v47 = vld [vmem:[#allocation2 + $0x30] sm:$0xff] }
  0xb4   :  { %v183_v23 = vpop.f32.mrf.mxu2 }
  0xb6   :  { %v165_v24 = vpop.f32.mrf.mxu0  ;;  %v619_v43 = vld [vmem:[#allocation2 + $0x8] sm:$0xff] }
  0xb7   :  { %v631_v25 = vpack.c.bf16 %v165_v24, %v163_v22 }
  0xb9   :  { %703 = vst [vmem:[#allocation2] sm:$0xff] %v631_v25  }
  0xbc   :  { %v185_v26 = vpop.f32.mrf.mxu2 }
  0xbd   :  { %v651_v27 = vpack.c.bf16 %v185_v26, %v183_v23 }
  0xbe   :  { %v168_v28 = vpop.f32.mrf.mxu0 }
  0xbf   :  { %707 = vst [vmem:[#allocation2 + $0x20] sm:$0xff] %v651_v27  }
  0xc0   :  { %v616_v46 = vld [vmem:[#allocation2] sm:$0xff] }
  0xc4   :  { %v188_v29 = vpop.f32.mrf.mxu2 }
  0xc6   :  { %v170_v30 = vpop.f32.mrf.mxu0  ;;  %v620_v42 = vld [vmem:[#allocation2 + $0x20] sm:$0xff] }
  0xc7   :  { %v636_v31 = vpack.c.bf16 %v170_v30, %v168_v28 }
  0xc9   :  { %704 = vst [vmem:[#allocation2 + $0x18] sm:$0xff] %v636_v31  }
  0xcc   :  { %v190_v32 = vpop.f32.mrf.mxu2 }
  0xcd   :  { %v656_v33 = vpack.c.bf16 %v190_v32, %v188_v29 }
  0xce   :  { %v173_v34 = vpop.f32.mrf.mxu0 }
  0xcf   :  { %708 = vst [vmem:[#allocation2 + $0x28] sm:$0xff] %v656_v33  }
  0xd0   :  { %v617_v45 = vld [vmem:[#allocation2 + $0x18] sm:$0xff] }
  0xd4   :  { %v193_v35 = vpop.f32.mrf.mxu2 }
  0xd6   :  { %v175_v36 = vpop.f32.mrf.mxu0  ;;  %v621_v41 = vld [vmem:[#allocation2 + $0x28] sm:$0xff] }
  0xd7   :  { %v641_v37 = vpack.c.bf16 %v175_v36, %v173_v34 }
  0xd9   :  { %705 = vst [vmem:[#allocation2 + $0x10] sm:$0xff] %v641_v37  }
  0xdc   :  { %v195_v38 = vpop.f32.mrf.mxu2 }
  0xdd   :  { %v661_v39 = vpack.c.bf16 %v195_v38, %v193_v35 }
  0xdf   :  { %709 = vst [vmem:[#allocation2 + $0x38] sm:$0xff] %v661_v39  }
  0xe0   :  { %v618_v44 = vld [vmem:[#allocation2 + $0x10] sm:$0xff] }
  0xe6   :  { %v622_v40 = vld [vmem:[#allocation2 + $0x38] sm:$0xff] }
  0xe7   :  { %362 = vmatpush.bf16.msra.mxu1 %v622_v40  ;;  %725 = vmatpush.bf16.msra.mxu3 %v622_v40 }
  0xeb   :  { %363 = vmatpush.bf16.msra.mxu1 %v621_v41  ;;  %726 = vmatpush.bf16.msra.mxu3 %v621_v41 }
  0xef   :  { %364 = vmatpush.bf16.msra.mxu1 %v620_v42  ;;  %727 = vmatpush.bf16.msra.mxu3 %v620_v42 }
  0xf3   :  { %365 = vmatpush.bf16.msra.mxu1 %v619_v43  ;;  %728 = vmatpush.bf16.msra.mxu3 %v619_v43 }
  0xf7   :  { %366 = vmatpush.bf16.msra.mxu1 %v618_v44  ;;  %729 = vmatpush.bf16.msra.mxu3 %v618_v44 }
  0xfb   :  { %367 = vmatpush.bf16.msra.mxu1 %v617_v45  ;;  %730 = vmatpush.bf16.msra.mxu3 %v617_v45 }
  0xff   :  { %368 = vmatpush.bf16.msra.mxu1 %v616_v46  ;;  %731 = vmatpush.bf16.msra.mxu3 %v616_v46 }
 0x103   :  { %369 = vmatpush.bf16.msra.mxu1 %v615_v47  ;;  %732 = vmatpush.bf16.msra.mxu3 %v615_v47 }
 0x106   :  { %370 = vmatmul.bf16.vlgmr.msra.gmra.mxu1 %v607_v48  ;;  %390 = vmatmul.bf16.vlgmr.msra.gmra.mxu3 %v611_v49 }
 0x116   :  { %375 = vmatmul.bf16.gmra.mxu1 %v608_v50  ;;  %395 = vmatmul.bf16.gmra.mxu3 %v612_v51 }
 0x126   :  { %380 = vmatmul.bf16.gmra.mxu1 %v609_v52  ;;  %400 = vmatmul.bf16.gmra.mxu3 %v613_v53 }
 0x136   :  { %385 = vmatmul.bf16.gmra.mxu1 %v610_v54  ;;  %405 = vmatmul.bf16.gmra.mxu3 %v614_v55 }
 0x183   :  { %v371_v56 = vpop.f32.mrf.mxu1 }
 0x184   :  { %v372_v59 = vadd.f32 %v733_v57, %v371_v56 }
 0x186   :  { %v411_v62 = vmax.f32 %v372_v59, 0.0 }
 0x189   :  { %v391_v58 = vpop.f32.mrf.mxu3 }
 0x18a   :  { %v392_v0 = vadd.f32 %v733_v57, %v391_v58 }
 0x18b   :  { %v373_v60 = vpop.f32.mrf.mxu1 }
 0x18c   :  { %v374_v61 = vadd.f32 %v733_v57, %v373_v60  ;;  %v419_v5 = vmax.f32 %v392_v0, 0.0 }
 0x18e   :  { %v412_v63 = vmax.f32 %v374_v61, 0.0 }
 0x190   :  { %v666_v1 = vpack.c.bf16 %v412_v63, %v411_v62 }
 0x191   :  { %v393_v2 = vpop.f32.mrf.mxu3 }
 0x192   :  { %667 = vst [vmem:[%s862_s4] sm:$0xff] %v666_v1   ;;  %v394_v3 = vadd.f32 %v733_v57, %v393_v2 }
 0x193   :  { %v376_v4 = vpop.f32.mrf.mxu1 }
 0x194   :  { %v420_v6 = vmax.f32 %v394_v3, 0.0  ;;  %v377_v9 = vadd.f32 %v733_v57, %v376_v4 }
 0x196   :  { %v686_v7 = vpack.c.bf16 %v420_v6, %v419_v5  ;;  %v413_v12 = vmax.f32 %v377_v9, 0.0 }
 0x198   :  { %713 = vst [vmem:[%s862_s4 + $0x20] sm:$0xff] %v686_v7  }
 0x199   :  { %v396_v8 = vpop.f32.mrf.mxu3 }
 0x19a   :  { %v397_v14 = vadd.f32 %v733_v57, %v396_v8 }
 0x19b   :  { %v378_v10 = vpop.f32.mrf.mxu1 }
 0x19c   :  { %v379_v11 = vadd.f32 %v733_v57, %v378_v10  ;;  %v421_v19 = vmax.f32 %v397_v14, 0.0 }
 0x19e   :  { %v414_v13 = vmax.f32 %v379_v11, 0.0 }
 0x1a0   :  { %v671_v15 = vpack.c.bf16 %v414_v13, %v413_v12 }
 0x1a1   :  { %v398_v16 = vpop.f32.mrf.mxu3 }
 0x1a2   :  { %710 = vst [vmem:[%s862_s4 + $0x8] sm:$0xff] %v671_v15   ;;  %v399_v17 = vadd.f32 %v733_v57, %v398_v16 }
 0x1a3   :  { %v381_v18 = vpop.f32.mrf.mxu1 }
 0x1a4   :  { %v422_v20 = vmax.f32 %v399_v17, 0.0  ;;  %v382_v23 = vadd.f32 %v733_v57, %v381_v18 }
 0x1a6   :  { %v691_v21 = vpack.c.bf16 %v422_v20, %v421_v19  ;;  %v415_v26 = vmax.f32 %v382_v23, 0.0 }
 0x1a8   :  { %714 = vst [vmem:[%s862_s4 + $0x28] sm:$0xff] %v691_v21  }
 0x1a9   :  { %v401_v22 = vpop.f32.mrf.mxu3 }
 0x1aa   :  { %v402_v28 = vadd.f32 %v733_v57, %v401_v22 }
 0x1ab   :  { %v383_v24 = vpop.f32.mrf.mxu1 }
 0x1ac   :  { %v384_v25 = vadd.f32 %v733_v57, %v383_v24  ;;  %v423_v33 = vmax.f32 %v402_v28, 0.0 }
 0x1ae   :  { %v416_v27 = vmax.f32 %v384_v25, 0.0 }
 0x1b0   :  { %v676_v29 = vpack.c.bf16 %v416_v27, %v415_v26 }
 0x1b1   :  { %v403_v30 = vpop.f32.mrf.mxu3 }
 0x1b2   :  { %711 = vst [vmem:[%s862_s4 + $0x10] sm:$0xff] %v676_v29   ;;  %v404_v31 = vadd.f32 %v733_v57, %v403_v30 }
 0x1b3   :  { %v386_v32 = vpop.f32.mrf.mxu1 }
 0x1b4   :  { %v424_v34 = vmax.f32 %v404_v31, 0.0  ;;  %v387_v37 = vadd.f32 %v733_v57, %v386_v32 }
 0x1b6   :  { %v696_v35 = vpack.c.bf16 %v424_v34, %v423_v33  ;;  %v417_v40 = vmax.f32 %v387_v37, 0.0 }
 0x1b8   :  { %715 = vst [vmem:[%s862_s4 + $0x30] sm:$0xff] %v696_v35  }
 0x1b9   :  { %v406_v36 = vpop.f32.mrf.mxu3 }
 0x1ba   :  { %v407_v42 = vadd.f32 %v733_v57, %v406_v36 }
 0x1bb   :  { %v388_v38 = vpop.f32.mrf.mxu1 }
 0x1bc   :  { %v389_v39 = vadd.f32 %v733_v57, %v388_v38  ;;  %v425_v46 = vmax.f32 %v407_v42, 0.0 }
 0x1be   :  { %v418_v41 = vmax.f32 %v389_v39, 0.0 }
 0x1c0   :  { %v681_v43 = vpack.c.bf16 %v418_v41, %v417_v40 }
 0x1c1   :  { %v408_v44 = vpop.f32.mrf.mxu3 }
 0x1c2   :  { %712 = vst [vmem:[%s862_s4 + $0x18] sm:$0xff] %v681_v43   ;;  %v409_v45 = vadd.f32 %v733_v57, %v408_v44 }
 0x1c4   :  { %v426_v47 = vmax.f32 %v409_v45, 0.0 }
 0x1c6   :  { %v701_v48 = vpack.c.bf16 %v426_v47, %v425_v46 }
 0x1c8   :  { %716 = vst [vmem:[%s862_s4 + $0x38] sm:$0xff] %v701_v48  }

// kernel: gcn_forward.3
= control target key start
LH: loop header
LB: loop body
LE: loop exit
PB: predicated region body
PF: predicated region fallthrough
CT: control target
= control target key end

     0   :  { %v411_v56 = vlaneseq  ;;  %s1201_s2 = inlined_call_operand.vmem [shape: bf16[128,128], index: 2, kind: input, shape index: {}]   ;;  %s1202_s1 = inlined_call_operand.vmem [shape: bf16[128,128], index: 1, kind: input, shape index: {}]   ;;  %s1203_s3 = inlined_call_operand.vmem [shape: f32[1,128], index: 3, kind: input, shape index: {}]   ;;  %s1204_s0 = inlined_call_operand.vmem [shape: bf16[128,128], index: 0, kind: input, shape index: {}]   ;;  %s1205_s4 = inlined_call_operand.vmem [shape: f32[128,128], index: 4, kind: output, shape index: {}]  }
   0x1   :  { %v753_v0 = vld [vmem:[%s1201_s2 + $0x38] sm:$0xff]  ;;  %v752_v1 = vld [vmem:[%s1201_s2 + $0x30] sm:$0xff]  ;;  %v751_v2 = vld [vmem:[%s1201_s2 + $0x28] sm:$0xff] }
   0x2   :  { %817 = vmatpush.bf16.msra.mxu2 %v753_v0  ;;  %149 = vmatpush.bf16.msra.mxu0 %v753_v0  ;;  %v750_v3 = vld [vmem:[%s1201_s2 + $0x20] sm:$0xff]  ;;  %v749_v4 = vld [vmem:[%s1201_s2 + $0x18] sm:$0xff]  ;;  %v748_v5 = vld [vmem:[%s1201_s2 + $0x10] sm:$0xff]  ;;  %v995_v57 = vand.u32 127, %v411_v56 }
   0x3   :  { %v747_v6 = vld [vmem:[%s1201_s2 + $0x8] sm:$0xff]  ;;  %v746_v7 = vld [vmem:[%s1201_s2] sm:$0xff]  ;;  %v744_v12 = vld [vmem:[%s1202_s1 + $0x30] sm:$0xff] }
   0x4   :  { %v742_v8 = vld [vmem:[%s1202_s1 + $0x20] sm:$0xff]  ;;  %v743_v10 = vld [vmem:[%s1202_s1 + $0x28] sm:$0xff]  ;;  %v740_v13 = vld [vmem:[%s1202_s1 + $0x10] sm:$0xff]  ;;  %vm413_vm0 = vcmp.lt.s32.totalorder %v995_v57, 8 }
   0x5   :  { %v738_v9 = vld [vmem:[%s1202_s1] sm:$0xff]  ;;  %v739_v11 = vld [vmem:[%s1202_s1 + $0x8] sm:$0xff]  ;;  %v745_v14 = vld [vmem:[%s1202_s1 + $0x38] sm:$0xff] }
   0x6   :  { %818 = vmatpush.bf16.msra.mxu2 %v752_v1  ;;  %150 = vmatpush.bf16.msra.mxu0 %v752_v1  ;;  %v741_v15 = vld [vmem:[%s1202_s1 + $0x18] sm:$0xff]  ;;  %v754_v48 = vld [vmem:[%s1204_s0] sm:$0xff]  ;;  %v755_v50 = vld [vmem:[%s1204_s0 + $0x8] sm:$0xff] }
   0x7   :  { %v758_v49 = vld [vmem:[%s1204_s0 + $0x20] sm:$0xff]  ;;  %v759_v51 = vld [vmem:[%s1204_s0 + $0x28] sm:$0xff]  ;;  %v756_v52 = vld [vmem:[%s1204_s0 + $0x10] sm:$0xff] }
   0x8   :  { %v760_v53 = vld [vmem:[%s1204_s0 + $0x30] sm:$0xff]  ;;  %v757_v54 = vld [vmem:[%s1204_s0 + $0x18] sm:$0xff]  ;;  %v833_v58 = vld [vmem:[%s1203_s3] ss:$0 sm:$0xff] }
   0x9   :  { %v761_v55 = vld [vmem:[%s1204_s0 + $0x38] sm:$0xff] }
   0xa   :  { %819 = vmatpush.bf16.msra.mxu2 %v751_v2  ;;  %151 = vmatpush.bf16.msra.mxu0 %v751_v2 }
   0xe   :  { %820 = vmatpush.bf16.msra.mxu2 %v750_v3  ;;  %152 = vmatpush.bf16.msra.mxu0 %v750_v3 }
  0x12   :  { %821 = vmatpush.bf16.msra.mxu2 %v749_v4  ;;  %153 = vmatpush.bf16.msra.mxu0 %v749_v4 }
  0x16   :  { %822 = vmatpush.bf16.msra.mxu2 %v748_v5  ;;  %154 = vmatpush.bf16.msra.mxu0 %v748_v5 }
  0x1a   :  { %823 = vmatpush.bf16.msra.mxu2 %v747_v6  ;;  %155 = vmatpush.bf16.msra.mxu0 %v747_v6 }
  0x1e   :  { %824 = vmatpush.bf16.msra.mxu2 %v746_v7  ;;  %156 = vmatpush.bf16.msra.mxu0 %v746_v7 }
  0x21   :  { %177 = vmatmul.bf16.vlgmr.msra.gmra.mxu2 %v742_v8  ;;  %157 = vmatmul.bf16.vlgmr.msra.gmra.mxu0 %v738_v9 }
  0x31   :  { %182 = vmatmul.bf16.gmra.mxu2 %v743_v10  ;;  %162 = vmatmul.bf16.gmra.mxu0 %v739_v11 }
  0x41   :  { %187 = vmatmul.bf16.gmra.mxu2 %v744_v12  ;;  %167 = vmatmul.bf16.gmra.mxu0 %v740_v13 }
  0x51   :  { %192 = vmatmul.bf16.gmra.mxu2 %v745_v14  ;;  %172 = vmatmul.bf16.gmra.mxu0 %v741_v15 }
  0x9e   :  { %v158_v16 = vpop.f32.mrf.mxu0 }
  0xa4   :  { %v178_v17 = vpop.f32.mrf.mxu2 }
  0xa6   :  { %v160_v18 = vpop.f32.mrf.mxu0 }
  0xa7   :  { %v773_v19 = vpack.c.bf16 %v160_v18, %v158_v16 }
  0xa9   :  { %774 = vst [vmem:[#allocation2 + $0x30] sm:$0xff] %v773_v19  }
  0xac   :  { %v180_v20 = vpop.f32.mrf.mxu2 }
  0xad   :  { %v793_v21 = vpack.c.bf16 %v180_v20, %v178_v17 }
  0xae   :  { %v163_v22 = vpop.f32.mrf.mxu0 }
  0xaf   :  { %813 = vst [vmem:[#allocation2 + $0x8] sm:$0xff] %v793_v21  }
  0xb0   :  { %v762_v47 = vld [vmem:[#allocation2 + $0x30] sm:$0xff] }
  0xb4   :  { %v183_v23 = vpop.f32.mrf.mxu2 }
  0xb6   :  { %v165_v24 = vpop.f32.mrf.mxu0  ;;  %v766_v43 = vld [vmem:[#allocation2 + $0x8] sm:$0xff] }
  0xb7   :  { %v778_v25 = vpack.c.bf16 %v165_v24, %v163_v22 }
  0xb9   :  { %810 = vst [vmem:[#allocation2] sm:$0xff] %v778_v25  }
  0xbc   :  { %v185_v26 = vpop.f32.mrf.mxu2 }
  0xbd   :  { %v798_v27 = vpack.c.bf16 %v185_v26, %v183_v23 }
  0xbe   :  { %v168_v28 = vpop.f32.mrf.mxu0 }
  0xbf   :  { %814 = vst [vmem:[#allocation2 + $0x20] sm:$0xff] %v798_v27  }
  0xc0   :  { %v763_v46 = vld [vmem:[#allocation2] sm:$0xff] }
  0xc4   :  { %v188_v29 = vpop.f32.mrf.mxu2 }
  0xc6   :  { %v170_v30 = vpop.f32.mrf.mxu0  ;;  %v767_v42 = vld [vmem:[#allocation2 + $0x20] sm:$0xff] }
  0xc7   :  { %v783_v31 = vpack.c.bf16 %v170_v30, %v168_v28 }
  0xc9   :  { %811 = vst [vmem:[#allocation2 + $0x18] sm:$0xff] %v783_v31  }
  0xcc   :  { %v190_v32 = vpop.f32.mrf.mxu2 }
  0xcd   :  { %v803_v33 = vpack.c.bf16 %v190_v32, %v188_v29 }
  0xce   :  { %v173_v34 = vpop.f32.mrf.mxu0 }
  0xcf   :  { %815 = vst [vmem:[#allocation2 + $0x28] sm:$0xff] %v803_v33  }
  0xd0   :  { %v764_v45 = vld [vmem:[#allocation2 + $0x18] sm:$0xff] }
  0xd4   :  { %v193_v35 = vpop.f32.mrf.mxu2 }
  0xd6   :  { %v175_v36 = vpop.f32.mrf.mxu0  ;;  %v768_v41 = vld [vmem:[#allocation2 + $0x28] sm:$0xff] }
  0xd7   :  { %v788_v37 = vpack.c.bf16 %v175_v36, %v173_v34 }
  0xd9   :  { %812 = vst [vmem:[#allocation2 + $0x10] sm:$0xff] %v788_v37  }
  0xdc   :  { %v195_v38 = vpop.f32.mrf.mxu2 }
  0xdd   :  { %v808_v39 = vpack.c.bf16 %v195_v38, %v193_v35 }
  0xdf   :  { %816 = vst [vmem:[#allocation2 + $0x38] sm:$0xff] %v808_v39  }
  0xe0   :  { %v765_v44 = vld [vmem:[#allocation2 + $0x10] sm:$0xff] }
  0xe6   :  { %v769_v40 = vld [vmem:[#allocation2 + $0x38] sm:$0xff] }
  0xe7   :  { %362 = vmatpush.bf16.msra.mxu1 %v769_v40  ;;  %825 = vmatpush.bf16.msra.mxu3 %v769_v40 }
  0xeb   :  { %363 = vmatpush.bf16.msra.mxu1 %v768_v41  ;;  %826 = vmatpush.bf16.msra.mxu3 %v768_v41 }
  0xef   :  { %364 = vmatpush.bf16.msra.mxu1 %v767_v42  ;;  %827 = vmatpush.bf16.msra.mxu3 %v767_v42 }
  0xf3   :  { %365 = vmatpush.bf16.msra.mxu1 %v766_v43  ;;  %828 = vmatpush.bf16.msra.mxu3 %v766_v43 }
  0xf7   :  { %366 = vmatpush.bf16.msra.mxu1 %v765_v44  ;;  %829 = vmatpush.bf16.msra.mxu3 %v765_v44 }
  0xfb   :  { %367 = vmatpush.bf16.msra.mxu1 %v764_v45  ;;  %830 = vmatpush.bf16.msra.mxu3 %v764_v45 }
  0xff   :  { %368 = vmatpush.bf16.msra.mxu1 %v763_v46  ;;  %831 = vmatpush.bf16.msra.mxu3 %v763_v46 }
 0x103   :  { %369 = vmatpush.bf16.msra.mxu1 %v762_v47  ;;  %832 = vmatpush.bf16.msra.mxu3 %v762_v47 }
 0x106   :  { %370 = vmatmul.bf16.vlgmr.msra.gmra.mxu1 %v754_v48  ;;  %390 = vmatmul.bf16.vlgmr.msra.gmra.mxu3 %v758_v49 }
 0x116   :  { %375 = vmatmul.bf16.gmra.mxu1 %v755_v50  ;;  %395 = vmatmul.bf16.gmra.mxu3 %v759_v51 }
 0x126   :  { %380 = vmatmul.bf16.gmra.mxu1 %v756_v52  ;;  %400 = vmatmul.bf16.gmra.mxu3 %v760_v53 }
 0x136   :  { %385 = vmatmul.bf16.gmra.mxu1 %v757_v54  ;;  %405 = vmatmul.bf16.gmra.mxu3 %v761_v55 }
 0x183   :  { %v371_v59 = vpop.f32.mrf.mxu1 }
 0x184   :  { %v372_v60 = vadd.f32 %v833_v58, %v371_v59 }
 0x186   :  { %v1003_v61 = vsel %vm413_vm0, %v372_v60, -1e+30 }
 0x187   :  { %430 = vmax.xlane.f32.xlu0 %v1003_v61 }
 0x189   :  { %v391_v62 = vpop.f32.mrf.mxu3 }
 0x18a   :  { %v392_v63 = vadd.f32 %v833_v58, %v391_v62 }
 0x18b   :  { %v373_v0 = vpop.f32.mrf.mxu1 }
 0x18c   :  { %v374_v1 = vadd.f32 %v833_v58, %v373_v0  ;;  %v422_v2 = vsel %vm413_vm0, %v392_v63, -1e+30 }
 0x18d   :  { %446 = vmax.xlane.f32.xlu2 %v422_v2 }
 0x18e   :  { %v415_v3 = vsel %vm413_vm0, %v374_v1, -1e+30 }
 0x18f   :  { %432 = vmax.xlane.f32.xlu0 %v415_v3 }
 0x191   :  { %v393_v4 = vpop.f32.mrf.mxu3 }
 0x192   :  { %v394_v5 = vadd.f32 %v833_v58, %v393_v4 }
 0x193   :  { %v376_v6 = vpop.f32.mrf.mxu1 }
 0x194   :  { %v377_v7 = vadd.f32 %v833_v58, %v376_v6  ;;  %v1016_v9 = vsel %vm413_vm0, %v394_v5, -1e+30 }
 0x196   :  { %v1012_v8 = vsel %vm413_vm0, %v377_v7, -1e+30 }
 0x197   :  { %434 = vmax.xlane.f32.xlu1 %v1012_v8  ;;  %448 = vmax.xlane.f32.xlu0 %v1016_v9 }
 0x199   :  { %v396_v10 = vpop.f32.mrf.mxu3 }
 0x19a   :  { %v397_v11 = vadd.f32 %v833_v58, %v396_v10 }
 0x19b   :  { %v378_v12 = vpop.f32.mrf.mxu1 }
 0x19c   :  { %v1022_v13 = vsel %vm413_vm0, %v397_v11, -1e+30  ;;  %v379_v15 = vadd.f32 %v833_v58, %v378_v12 }
 0x19e   :  { %v1032_v19 = vsel %vm413_vm0, %v379_v15, -1e+30 }
 0x19f   :  { %450 = vmax.xlane.f32.xlu1 %v1022_v13 }
 0x1a1   :  { %v398_v14 = vpop.f32.mrf.mxu3 }
 0x1a2   :  { %v399_v16 = vadd.f32 %v833_v58, %v398_v14 }
 0x1a3   :  { %v381_v17 = vpop.f32.mrf.mxu1 }
 0x1a4   :  { %v1027_v18 = vsel %vm413_vm0, %v399_v16, -1e+30  ;;  %v382_v20 = vadd.f32 %v833_v58, %v381_v17 }
 0x1a5   :  { %452 = vmax.xlane.f32.xlu2 %v1027_v18 }
 0x1a6   :  { %v1037_v24 = vsel %vm413_vm0, %v382_v20, -1e+30 }
 0x1a7   :  { %436 = vmax.xlane.f32.xlu1 %v1032_v19 }
 0x1a9   :  { %v401_v21 = vpop.f32.mrf.mxu3 }
 0x1aa   :  { %v402_v22 = vadd.f32 %v833_v58, %v401_v21 }
 0x1ab   :  { %v383_v23 = vpop.f32.mrf.mxu1 }
 0x1ac   :  { %v1041_v25 = vsel %vm413_vm0, %v402_v22, -1e+30  ;;  %v384_v26 = vadd.f32 %v833_v58, %v383_v23 }
 0x1ad   :  { %438 = vmax.xlane.f32.xlu2 %v1037_v24  ;;  %454 = vmax.xlane.f32.xlu0 %v1041_v25 }
 0x1ae   :  { %v1047_v31 = vsel %vm413_vm0, %v384_v26, -1e+30 }
 0x1b1   :  { %v403_v27 = vpop.f32.mrf.mxu3 }
 0x1b2   :  { %v404_v28 = vadd.f32 %v833_v58, %v403_v27 }
 0x1b3   :  { %v386_v29 = vpop.f32.mrf.mxu1 }
 0x1b4   :  { %v387_v30 = vadd.f32 %v833_v58, %v386_v29  ;;  %v1051_v32 = vsel %vm413_vm0, %v404_v28, -1e+30 }
 0x1b5   :  { %440 = vmax.xlane.f32.xlu2 %v1047_v31 }
 0x1b6   :  { %v1056_v33 = vsel %vm413_vm0, %v387_v30, -1e+30 }
 0x1b7   :  { %442 = vmax.xlane.f32.xlu0 %v1056_v33 }
 0x1b9   :  { %v406_v34 = vpop.f32.mrf.mxu3 }
 0x1ba   :  { %v407_v35 = vadd.f32 %v833_v58, %v406_v34 }
 0x1bb   :  { %v388_v36 = vpop.f32.mrf.mxu1 }
 0x1bc   :  { %v389_v37 = vadd.f32 %v833_v58, %v388_v36  ;;  %v1061_v38 = vsel %vm413_vm0, %v407_v35, -1e+30 }
 0x1bd   :  { %458 = vmax.xlane.f32.xlu2 %v1061_v38 }
 0x1be   :  { %v1066_v39 = vsel %vm413_vm0, %v389_v37, -1e+30 }
 0x1bf   :  { %444 = vmax.xlane.f32.xlu1 %v1066_v39 }
 0x1c1   :  { %v408_v40 = vpop.f32.mrf.mxu3 }
 0x1c2   :  { %v409_v41 = vadd.f32 %v833_v58, %v408_v40 }
 0x1c4   :  { %v1071_v42 = vsel %vm413_vm0, %v409_v41, -1e+30 }
 0x1c5   :  { %460 = vmax.xlane.f32.xlu0 %v1071_v42 }
 0x1c7   :  { %456 = vmax.xlane.f32.xlu1 %v1051_v32 }
 0x1fa   :  { %v431_v43 = vpop.xlane.xlu0 %430 }
 0x1fb   :  { %v1076_v44 = vsub.f32 %v1003_v61, %v431_v43 }
 0x1fd   :  { %v478_v45 = vmul.f32 1.442695, %v1076_v44 }
 0x1ff   :  { %834 = vpow2.f32 %v478_v45 }
 0x200   :  { %v447_v46 = vpop.xlane.xlu2 %446 }
 0x201   :  { %v1079_v47 = vsub.f32 %v422_v2, %v447_v46 }
 0x202   :  { %v433_v48 = vpop.xlane.xlu0 %432 }
 0x203   :  { %v494_v49 = vmul.f32 1.442695, %v1079_v47  ;;  %v1082_v50 = vsub.f32 %v415_v3, %v433_v48 }
 0x205   :  { %v835_v51 = vpop.eup %834  ;;  %836 = vpow2.f32 %v494_v49  ;;  %v480_v52 = vmul.f32 1.442695, %v1082_v50 }
 0x206   :  { %510 = vadd.xlane.f32.xlu1 %v835_v51 }
 0x207   :  { %838 = vpow2.f32 %v480_v52 }
 0x20a   :  { %v435_v53 = vpop.xlane.xlu1 %434  ;;  %v449_v54 = vpop.xlane.xlu0 %448 }
 0x20b   :  { %v837_v55 = vpop.eup %836  ;;  %v1086_v56 = vsub.f32 %v1012_v8, %v435_v53  ;;  %v1089_v57 = vsub.f32 %v1016_v9, %v449_v54 }
 0x20c   :  { %526 = vadd.xlane.f32.xlu0 %v837_v55 }
 0x20d   :  { %v839_v58 = vpop.eup %838  ;;  %v482_v59 = vmul.f32 1.442695, %v1086_v56  ;;  %v496_v60 = vmul.f32 1.442695, %v1089_v57 }
 0x20e   :  { %512 = vadd.xlane.f32.xlu2 %v839_v58 }
 0x20f   :  { %840 = vpow2.f32 %v482_v59 }
 0x210   :  { %842 = vpow2.f32 %v496_v60 }
 0x212   :  { %v451_v61 = vpop.xlane.xlu1 %450 }
 0x213   :  { %v1094_v62 = vsub.f32 %v1022_v13, %v451_v61 }
 0x215   :  { %v841_v63 = vpop.eup %840  ;;  %v498_v0 = vmul.f32 1.442695, %v1094_v62 }
 0x216   :  { %v843_v1 = vpop.eup %842  ;;  %514 = vadd.xlane.f32.xlu0 %v841_v63 }
 0x217   :  { %844 = vpow2.f32 %v498_v0  ;;  %528 = vadd.xlane.f32.xlu1 %v843_v1 }
 0x218   :  { %v453_v2 = vpop.xlane.xlu2 %452 }
 0x219   :  { %v1098_v3 = vsub.f32 %v1027_v18, %v453_v2 }
 0x21a   :  { %v437_v4 = vpop.xlane.xlu1 %436 }
 0x21b   :  { %v500_v5 = vmul.f32 1.442695, %v1098_v3  ;;  %v1102_v6 = vsub.f32 %v1032_v19, %v437_v4 }
 0x21d   :  { %v845_v7 = vpop.eup %844  ;;  %846 = vpow2.f32 %v500_v5  ;;  %v484_v8 = vmul.f32 1.442695, %v1102_v6 }
 0x21e   :  { %530 = vadd.xlane.f32.xlu2 %v845_v7 }
 0x21f   :  { %848 = vpow2.f32 %v484_v8 }
 0x220   :  { %v439_v9 = vpop.xlane.xlu2 %438  ;;  %v455_v10 = vpop.xlane.xlu0 %454 }
 0x221   :  { %v1106_v11 = vsub.f32 %v1037_v24, %v439_v9  ;;  %v1109_v12 = vsub.f32 %v1041_v25, %v455_v10 }
 0x223   :  { %v847_v13 = vpop.eup %846  ;;  %v486_v14 = vmul.f32 1.442695, %v1106_v11  ;;  %v502_v15 = vmul.f32 1.442695, %v1109_v12 }
 0x224   :  { %532 = vadd.xlane.f32.xlu0 %v847_v13 }
 0x225   :  { %v849_v16 = vpop.eup %848  ;;  %850 = vpow2.f32 %v486_v14 }
 0x226   :  { %516 = vadd.xlane.f32.xlu1 %v849_v16  ;;  %852 = vpow2.f32 %v502_v15 }
 0x228   :  { %v441_v17 = vpop.xlane.xlu2 %440 }
 0x229   :  { %v1114_v18 = vsub.f32 %v1047_v31, %v441_v17 }
 0x22a   :  { %v443_v19 = vpop.xlane.xlu0 %442 }
 0x22b   :  { %v851_v20 = vpop.eup %850  ;;  %v488_v21 = vmul.f32 1.442695, %v1114_v18  ;;  %v1118_v22 = vsub.f32 %v1056_v33, %v443_v19 }
 0x22c   :  { %518 = vadd.xlane.f32.xlu2 %v851_v20  ;;  %v853_v23 = vpop.eup %852 }
 0x22d   :  { %854 = vpow2.f32 %v488_v21  ;;  %v490_v24 = vmul.f32 1.442695, %v1118_v22 }
 0x22e   :  { %534 = vadd.xlane.f32.xlu1 %v853_v23 }
 0x22f   :  { %856 = vpow2.f32 %v490_v24 }
 0x230   :  { %v459_v25 = vpop.xlane.xlu2 %458 }
 0x231   :  { %v1122_v26 = vsub.f32 %v1061_v38, %v459_v25 }
 0x232   :  { %v445_v27 = vpop.xlane.xlu1 %444 }
 0x233   :  { %v855_v28 = vpop.eup %854  ;;  %v506_v29 = vmul.f32 1.442695, %v1122_v26  ;;  %v1126_v30 = vsub.f32 %v1066_v39, %v445_v27 }
 0x234   :  { %520 = vadd.xlane.f32.xlu0 %v855_v28 }
 0x235   :  { %v857_v31 = vpop.eup %856  ;;  %858 = vpow2.f32 %v506_v29  ;;  %v492_v33 = vmul.f32 1.442695, %v1126_v30 }
 0x236   :  { %522 = vadd.xlane.f32.xlu1 %v857_v31 }
 0x237   :  { %860 = vpow2.f32 %v492_v33 }
 0x238   :  { %v461_v34 = vpop.xlane.xlu0 %460 }
 0x239   :  { %v1130_v35 = vsub.f32 %v1071_v42, %v461_v34 }
 0x23a   :  { %v457_v36 = vpop.xlane.xlu1 %456 }
 0x23b   :  { %v859_v37 = vpop.eup %858  ;;  %v508_v38 = vmul.f32 1.442695, %v1130_v35  ;;  %v1134_v40 = vsub.f32 %v1051_v32, %v457_v36 }
 0x23c   :  { %538 = vadd.xlane.f32.xlu0 %v859_v37 }
 0x23d   :  { %v861_v39 = vpop.eup %860  ;;  %862 = vpow2.f32 %v508_v38  ;;  %v504_v41 = vmul.f32 1.442695, %v1134_v40 }
 0x23e   :  { %524 = vadd.xlane.f32.xlu2 %v861_v39 }
 0x23f   :  { %864 = vpow2.f32 %v504_v41 }
 0x243   :  { %v863_v43 = vpop.eup %862 }
 0x244   :  { %540 = vadd.xlane.f32.xlu1 %v863_v43 }
 0x245   :  { %v865_v45 = vpop.eup %864 }
 0x246   :  { %536 = vadd.xlane.f32.xlu2 %v865_v45 }
 0x279   :  { %v511_v42 = vpop.xlane.xlu1 %510 }
 0x27a   :  { %866 = vlog2.f32 %v511_v42 }
 0x27f   :  { %v527_v46 = vpop.xlane.xlu0 %526 }
 0x280   :  { %v867_v48 = vpop.eup %866  ;;  %868 = vlog2.f32 %v527_v46 }
 0x281   :  { %v543_v49 = vmul.f32 0.6931472, %v867_v48  ;;  %v513_v51 = vpop.xlane.xlu2 %512 }
 0x282   :  { %870 = vlog2.f32 %v513_v51 }
 0x283   :  { %v574_v32 = vsub.f32 %v1076_v44, %v543_v49 }
 0x285   :  { %590 = vst [vmem:[%s1205_s4] sm:$0xff] %v574_v32 }
 0x286   :  { %v869_v52 = vpop.eup %868 }
 0x287   :  { %v559_v53 = vmul.f32 0.6931472, %v869_v52 }
 0x288   :  { %v871_v54 = vpop.eup %870 }
 0x289   :  { %v582_v55 = vsub.f32 %v1079_v47, %v559_v53  ;;  %v545_v58 = vmul.f32 0.6931472, %v871_v54  ;;  %v515_v59 = vpop.xlane.xlu0 %514 }
 0x28a   :  { %v529_v60 = vpop.xlane.xlu1 %528  ;;  %872 = vlog2.f32 %v515_v59 }
 0x28b   :  { %598 = vst [vmem:[%s1205_s4 + $0x40] sm:$0xff] %v582_v55  ;;  %v575_v61 = vsub.f32 %v1082_v50, %v545_v58  ;;  %874 = vlog2.f32 %v529_v60 }
 0x28d   :  { %591 = vst [vmem:[%s1205_s4 + $0x8] sm:$0xff] %v575_v61 }
 0x290   :  { %v873_v44 = vpop.eup %872 }
 0x291   :  { %v875_v63 = vpop.eup %874  ;;  %v547_v0 = vmul.f32 0.6931472, %v873_v44  ;;  %v531_v1 = vpop.xlane.xlu2 %530 }
 0x292   :  { %v561_v47 = vmul.f32 0.6931472, %v875_v63  ;;  %876 = vlog2.f32 %v531_v1 }
 0x293   :  { %v576_v2 = vsub.f32 %v1086_v56, %v547_v0 }
 0x294   :  { %v583_v4 = vsub.f32 %v1089_v57, %v561_v47 }
 0x295   :  { %592 = vst [vmem:[%s1205_s4 + $0x10] sm:$0xff] %v576_v2 }
 0x296   :  { %599 = vst [vmem:[%s1205_s4 + $0x48] sm:$0xff] %v583_v4 }
 0x297   :  { %v533_v50 = vpop.xlane.xlu0 %532 }
 0x298   :  { %v877_v5 = vpop.eup %876  ;;  %878 = vlog2.f32 %v533_v50 }
 0x299   :  { %v563_v7 = vmul.f32 0.6931472, %v877_v5  ;;  %v517_v8 = vpop.xlane.xlu1 %516 }
 0x29a   :  { %880 = vlog2.f32 %v517_v8 }
 0x29b   :  { %v584_v9 = vsub.f32 %v1094_v62, %v563_v7 }
 0x29d   :  { %600 = vst [vmem:[%s1205_s4 + $0x50] sm:$0xff] %v584_v9 }
 0x29e   :  { %v879_v56 = vpop.eup %878 }
 0x29f   :  { %v565_v57 = vmul.f32 0.6931472, %v879_v56  ;;  %v519_v10 = vpop.xlane.xlu2 %518 }
 0x2a0   :  { %v881_v13 = vpop.eup %880  ;;  %882 = vlog2.f32 %v519_v10 }
 0x2a1   :  { %v585_v14 = vsub.f32 %v1098_v3, %v565_v57  ;;  %v549_v15 = vmul.f32 0.6931472, %v881_v13  ;;  %v535_v16 = vpop.xlane.xlu1 %534 }
 0x2a2   :  { %884 = vlog2.f32 %v535_v16 }
 0x2a3   :  { %601 = vst [vmem:[%s1205_s4 + $0x58] sm:$0xff] %v585_v14  ;;  %v577_v62 = vsub.f32 %v1102_v6, %v549_v15 }
 0x2a5   :  { %593 = vst [vmem:[%s1205_s4 + $0x18] sm:$0xff] %v577_v62 }
 0x2a6   :  { %v883_v17 = vpop.eup %882 }
 0x2a7   :  { %v551_v19 = vmul.f32 0.6931472, %v883_v17  ;;  %v521_v20 = vpop.xlane.xlu0 %520 }
 0x2a8   :  { %v885_v21 = vpop.eup %884  ;;  %886 = vlog2.f32 %v521_v20 }
 0x2a9   :  { %v578_v3 = vsub.f32 %v1106_v11, %v551_v19  ;;  %v567_v23 = vmul.f32 0.6931472, %v885_v21  ;;  %v523_v24 = vpop.xlane.xlu1 %522 }
 0x2aa   :  { %888 = vlog2.f32 %v523_v24 }
 0x2ab   :  { %594 = vst [vmem:[%s1205_s4 + $0x20] sm:$0xff] %v578_v3  ;;  %v586_v6 = vsub.f32 %v1109_v12, %v567_v23 }
 0x2ad   :  { %602 = vst [vmem:[%s1205_s4 + $0x60] sm:$0xff] %v586_v6 }
 0x2ae   :  { %v887_v25 = vpop.eup %886 }
 0x2af   :  { %v553_v27 = vmul.f32 0.6931472, %v887_v25  ;;  %v539_v28 = vpop.xlane.xlu0 %538 }
 0x2b0   :  { %v889_v29 = vpop.eup %888  ;;  %890 = vlog2.f32 %v539_v28 }
 0x2b1   :  { %v579_v11 = vsub.f32 %v1114_v18, %v553_v27  ;;  %v555_v31 = vmul.f32 0.6931472, %v889_v29  ;;  %v525_v33 = vpop.xlane.xlu2 %524 }
 0x2b2   :  { %892 = vlog2.f32 %v525_v33 }
 0x2b3   :  { %595 = vst [vmem:[%s1205_s4 + $0x28] sm:$0xff] %v579_v11  ;;  %v580_v12 = vsub.f32 %v1118_v22, %v555_v31 }
 0x2b5   :  { %596 = vst [vmem:[%s1205_s4 + $0x30] sm:$0xff] %v580_v12 }
 0x2b6   :  { %v891_v34 = vpop.eup %890 }
 0x2b7   :  { %v571_v36 = vmul.f32 0.6931472, %v891_v34  ;;  %v541_v37 = vpop.xlane.xlu1 %540 }
 0x2b8   :  { %v893_v38 = vpop.eup %892  ;;  %894 = vlog2.f32 %v541_v37 }
 0x2b9   :  { %v588_v18 = vsub.f32 %v1122_v26, %v571_v36  ;;  %v557_v39 = vmul.f32 0.6931472, %v893_v38  ;;  %v537_v41 = vpop.xlane.xlu2 %536 }
 0x2ba   :  { %896 = vlog2.f32 %v537_v41 }
 0x2bb   :  { %604 = vst [vmem:[%s1205_s4 + $0x70] sm:$0xff] %v588_v18  ;;  %v581_v22 = vsub.f32 %v1126_v30, %v557_v39 }
 0x2bd   :  { %597 = vst [vmem:[%s1205_s4 + $0x38] sm:$0xff] %v581_v22 }
 0x2be   :  { %v895_v43 = vpop.eup %894 }
 0x2bf   :  { %v573_v45 = vmul.f32 0.6931472, %v895_v43 }
 0x2c0   :  { %v897_v42 = vpop.eup %896 }
 0x2c1   :  { %v589_v46 = vsub.f32 %v1130_v35, %v573_v45  ;;  %v569_v48 = vmul.f32 0.6931472, %v897_v42 }
 0x2c3   :  { %605 = vst [vmem:[%s1205_s4 + $0x78] sm:$0xff] %v589_v46  ;;  %v587_v26 = vsub.f32 %v1134_v40, %v569_v48 }
 0x2c5   :  { %603 = vst [vmem:[%s1205_s4 + $0x68] sm:$0xff] %v587_v26 }

</bundles_post_ra>
